<compile_context>
chip_gen: v5e
topology: v5e:2x2
jax: 0.10.0
libtpu: 0.0.40
codegen_flags: <defaults>
</compile_context>

<pallas_src>
import functools
import math

import jax
import jax.numpy as jnp
from jax.experimental import pallas as pl
from jax.experimental.pallas import tpu as pltpu


def _round_up(x, m):
    return ((x + m - 1) // m) * m


def _gelu_new(x):
    # PyTorch gelu_new: 0.5*x*(1 + tanh(sqrt(2/pi)*(x + 0.044715*x^3)))
    c = math.sqrt(2.0 / math.pi)
    return 0.5 * x * (1.0 + jnp.tanh(c * (x + 0.044715 * (x * (x * x)))))


def _vmem_capacity_bytes():
    try:
        return int(pltpu.get_tpu_info().vmem_capacity_bytes)
    except Exception:
        return 64 << 20  # conservative (v7x per-TC); v5e/v6e have 128 MiB


def _choose_tm(M, max_tm=512):
    """Row tile: big enough for the MXU, bounded padding waste, megacore-aware."""
    M8 = _round_up(M, 8)
    if M8 <= max_tm:
        if M8 >= 256 and (M8 // 2) % 8 == 0:
            return M8 // 2  # two tiles -> both v7x TensorCores stay busy
        return M8
    best, best_pad = 128, None
    for cand in (512, 384, 256, 192, 128, 96, 64, 48, 32, 16, 8):
        if cand > max_tm:
            continue
        pad = _round_up(M, cand) - M
        if pad <= M // 16:  # <= ~6% wasted rows
            return cand
        if best_pad is None or pad < best_pad:
            best, best_pad = cand, pad
    return best


def _vmem_estimate(tm, D_pad, th, nk, x_item, out_item, w_item):
    nbuf_w = 1 if nk == 1 else 2  # weight slabs single-buffered only if grid-invariant
    return (2 * tm * D_pad * x_item          # x tile (double-buffered)
            + 2 * tm * D_pad * out_item      # out tile (double-buffered)
            + tm * D_pad * 4                 # f32 accumulator scratch
            + nbuf_w * D_pad * th * w_item   # w1 slab
            + nbuf_w * th * D_pad * w_item   # w2 slab
            + nbuf_w * th * 4 + D_pad * 4    # biases (f32)
            + 2 * tm * th * 4                # h and gelu(h) f32 intermediates
            + tm * th * 2 + tm * D_pad * 2)  # bf16 copies feeding the MXU


def _choose_th(H_pad, D_pad, tm, x_item, out_item, w_item, budget):
    cands = [c for c in range(H_pad, 127, -128) if H_pad % c == 0]
    for th in cands:
        nk = H_pad // th
        if _vmem_estimate(tm, D_pad, th, nk, x_item, out_item, w_item) * 1.2 <= budget:
            return th
    return cands[-1]  # 128: smallest lane-dense slab


def ffn_kernel(x_ref, w1_ref, b1_ref, w2_ref, b2_ref, o_ref, acc_ref, *, activation):
    # Grid: (M tiles, H slabs). Output & x blocks are invariant along the H axis.
    k = pl.program_id(1)

    @pl.when(k == 0)
    def _():
        acc_ref[...] = jnp.zeros_like(acc_ref)

    mxu_dtype = w1_ref.dtype  # bf16 by default
    # lin1: bf16 operands into the MXU, f32 accumulation.
    h = jnp.dot(x_ref[...].astype(mxu_dtype), w1_ref[...],
                preferred_element_type=jnp.float32)
    h = h + b1_ref[...]

    if activation == "gelu":
        # tanh-approx GELU == gelu_new; tanh lowers to the EUP. Kept in f32
        # (v5e-safe; EUP slot is free next to the MXU anyway).
        a = jax.nn.gelu(h, approximate=True)
    else:  # relu
        a = jnp.maximum(h, 0.0)

    # lin2 partial product over this H slab, accumulated in f32 VMEM scratch.
    acc_ref[...] += jnp.dot(a.astype(mxu_dtype), w2_ref[...],
                            preferred_element_type=jnp.float32)

    @pl.when(k == pl.num_programs(1) - 1)
    def _():
        # TODO(synk): training-mode dropout would be applied here via pltpu.prng_*.
        o_ref[...] = (acc_ref[...] + b2_ref[...]).astype(o_ref.dtype)


def ffn_forward(x, w1, b1, w2, b2, *, activation="gelu",
                mxu_dtype=jnp.bfloat16, max_tm=512):
    """x: [B, S, D]; w1: [D, H]; b1: [H]; w2: [H, D]; b2: [D]  ->  [B, S, D]."""
    assert activation in ("relu", "gelu")
    B, S, D = x.shape
    H = w1.shape[1]
    M = B * S

    mxu_dt = jnp.dtype(mxu_dtype) if mxu_dtype is not None else jnp.dtype(x.dtype)

    D_pad = _round_up(D, 128)
    H_pad = _round_up(H, 128)
    tm = _choose_tm(M, max_tm)
    M_pad = _round_up(M, tm)

    budget = int(0.85 * _vmem_capacity_bytes())  # headroom for Mosaic scratch/sems
    x_item = jnp.dtype(x.dtype).itemsize
    w_item = mxu_dt.itemsize
    th = _choose_th(H_pad, D_pad, tm, x_item, x_item, w_item, budget)
    nk = H_pad // th
    est = _vmem_estimate(tm, D_pad, th, nk, x_item, x_item, w_item)
    vmem_limit = int(min(budget, max(32 << 20, int(est * 1.5))))

    # Operand prep: cast weights to the MXU dtype once (halves weight HBM
    # traffic); pad only when dims aren't already aligned (zero padding is
    # exact: padded hidden columns see bias 0 -> gelu(0)=0 -> contribute 0).
    x2 = x.reshape(M, D)
    if (M_pad, D_pad) != (M, D):
        x2 = jnp.pad(x2, ((0, M_pad - M), (0, D_pad - D)))
    w1p = w1.astype(mxu_dt)
    w2p = w2.astype(mxu_dt)
    if (D_pad, H_pad) != (D, H):
        w1p = jnp.pad(w1p, ((0, D_pad - D), (0, H_pad - H)))
        w2p = jnp.pad(w2p, ((0, H_pad - H), (0, D_pad - D)))
    b1p = b1.astype(jnp.float32).reshape(1, H)
    b2p = b2.astype(jnp.float32).reshape(1, D)
    if H_pad != H:
        b1p = jnp.pad(b1p, ((0, 0), (0, H_pad - H)))
    if D_pad != D:
        b2p = jnp.pad(b2p, ((0, 0), (0, D_pad - D)))

    kernel = functools.partial(ffn_kernel, activation=activation)

    flops = 4 * M_pad * D_pad * H_pad
    transc = M_pad * H_pad if activation == "gelu" else 0
    bytes_accessed = int(x2.size * x_item
                         + (M_pad // tm) * (w1p.size + w2p.size) * w_item
                         + M_pad * D_pad * x_item)

    def _bspec(shape, index_map, buffers, use_buffered):
        if buffers is None or not use_buffered or not hasattr(pl, "Buffered"):
            return pl.BlockSpec(shape, index_map)
        try:
            return pl.BlockSpec(shape, index_map, pipeline_mode=pl.Buffered(buffers))
        except TypeError:  # pipeline_mode kwarg unsupported on this jax version
            return pl.BlockSpec(shape, index_map)

    # Weight slabs are grid-invariant only when there is no H split.
    w_buffers = 1 if nk == 1 else None

    def _call(use_buffered):
        return pl.pallas_call(
            kernel,
            out_shape=jax.ShapeDtypeStruct((M_pad, D_pad), x.dtype),
            grid_spec=pltpu.PrefetchScalarGridSpec(
                num_scalar_prefetch=0,
                grid=(M_pad // tm, nk),
                in_specs=[
                    _bspec((tm, D_pad), lambda i, k: (i, 0), None, use_buffered),       # x
                    _bspec((D_pad, th), lambda i, k: (0, k), w_buffers, use_buffered),  # w1
                    _bspec((1, th), lambda i, k: (0, k), w_buffers, use_buffered),      # b1
                    _bspec((th, D_pad), lambda i, k: (k, 0), w_buffers, use_buffered),  # w2
                    _bspec((1, D_pad), lambda i, k: (0, 0), 1, use_buffered),           # b2
                ],
                out_specs=_bspec((tm, D_pad), lambda i, k: (i, 0), None, use_buffered),
                scratch_shapes=[pltpu.VMEM((tm, D_pad), jnp.float32)],
            ),
            compiler_params=pltpu.CompilerParams(
                dimension_semantics=("parallel", "arbitrary"),
                vmem_limit_bytes=vmem_limit,
            ),
            cost_estimate=pl.CostEstimate(
                flops=flops, transcendentals=transc, bytes_accessed=bytes_accessed),
        )(x2, w1p, b1p, w2p, b2p)

    try:
        out = _call(use_buffered=True)
    except Exception:
        # Fallback: identical kernel without explicit pipeline_mode hints.
        out = _call(use_buffered=False)

    if (M_pad, D_pad) != (M, D):
        out = out[:M, :D]
    return out.reshape(B, S, D)


def ffn_reference(x, w1, b1, w2, b2, *, activation="gelu", mxu_dtype=None):
    wd = jnp.dtype(mxu_dtype) if mxu_dtype is not None else w1.dtype
    h = jnp.dot(x.astype(wd), w1.astype(wd),
                preferred_element_type=jnp.float32) + b1
    a = _gelu_new(h) if activation == "gelu" else jnp.maximum(h, 0.0)
    return jnp.dot(a.astype(wd), w2.astype(wd),
                   preferred_element_type=jnp.float32) + b2


if __name__ == "__main__":
    # config: dim=32, hidden_dim=64, activation='gelu', ffn_dropout (eval -> identity)
    B, S, D, Hd = 2, 8, 32, 64

    key = jax.random.PRNGKey(0)
    kx, kw1, kb1, kw2, kb2 = jax.random.split(key, 5)

    x = jax.random.normal(kx, (B, S, D), dtype=jnp.float32)
    # deterministic "Linear"-style init; stored pre-transposed as [in, out]
    w1 = jax.random.normal(kw1, (D, Hd), dtype=jnp.float32) / math.sqrt(D)
    b1 = jax.random.normal(kb1, (Hd,), dtype=jnp.float32) * 0.02
    w2 = jax.random.normal(kw2, (Hd, D), dtype=jnp.float32) / math.sqrt(Hd)
    b2 = jax.random.normal(kb2, (D,), dtype=jnp.float32) * 0.02

    y = jax.block_until_ready(ffn_forward(x, w1, b1, w2, b2))

    # Matched-precision reference (bf16 operands at both matmuls, f32 accumulation).
    y_ref_bf16 = ffn_reference(x, w1, b1, w2, b2, mxu_dtype=jnp.bfloat16)
    # Full-f32 reference as a loose sanity check.
    y_ref_f32 = ffn_reference(x, w1, b1, w2, b2)

    assert y.shape == (B, S, D)
    assert jnp.allclose(y, y_ref_bf16, atol=2e-3, rtol=2e-3), \
        "mismatch vs matched-precision reference"
    assert jnp.allclose(y, y_ref_f32, atol=5e-2, rtol=5e-2), \
        "mismatch vs f32 reference"

    print("KERNEL_OK")
</pallas_src>

<mosaic_0001>
module attributes {stable_mosaic.version = 11 : i64} {
  func.func @ffn_kernel(%arg0: i32, %arg1: i32, %arg2: memref<16x128xf32, #tpu.memory_space<vmem>>, %arg3: memref<128x128xbf16, #tpu.memory_space<vmem>>, %arg4: memref<1x128xf32, #tpu.memory_space<vmem>>, %arg5: memref<128x128xbf16, #tpu.memory_space<vmem>>, %arg6: memref<1x128xf32, #tpu.memory_space<vmem>>, %arg7: memref<16x128xf32, #tpu.memory_space<vmem>>, %arg8: memref<16x128xf32, #tpu.memory_space<vmem>>) attributes {dimension_semantics = [#tpu.dimension_semantics<parallel>, #tpu.dimension_semantics<arbitrary>], iteration_bounds = array<i64: 1, 1>, scalar_prefetch = 0 : i64, scratch_operands = 1 : i64, tpu.core_type = #tpu.core_type<tc>, window_params = [{transform_indices = @transform_0, window_bounds = array<i64: 16, 128>}, {pipeline_mode = #tpu.pipeline_mode<synchronous>, transform_indices = @transform_1, window_bounds = array<i64: 128, 128>}, {pipeline_mode = #tpu.pipeline_mode<synchronous>, transform_indices = @transform_2, window_bounds = array<i64: 1, 128>}, {pipeline_mode = #tpu.pipeline_mode<synchronous>, transform_indices = @transform_3, window_bounds = array<i64: 128, 128>}, {pipeline_mode = #tpu.pipeline_mode<synchronous>, transform_indices = @transform_4, window_bounds = array<i64: 1, 128>}, {transform_indices = @transform_5, window_bounds = array<i64: 16, 128>}]} {
    %c0_i32 = arith.constant 0 : i32
    %0 = arith.cmpi eq, %arg1, %c0_i32 : i32
    %1 = arith.extui %0 : i1 to i32
    %c0_i32_0 = arith.constant 0 : i32
    %2 = arith.cmpi ne, %1, %c0_i32_0 : i32
    scf.if %2 {
      %cst_19 = arith.constant 0.000000e+00 : f32
      %32 = vector.broadcast %cst_19 : f32 to vector<16x128xf32>
      %c0_20 = arith.constant 0 : index
      %c0_21 = arith.constant 0 : index
      %33 = vector.load %arg8[%c0_20, %c0_21] : memref<16x128xf32, #tpu.memory_space<vmem>>, vector<16x128xf32>
      tpu.vector_store %arg8[%c0_20, %c0_21], %32 {strides = array<i32>} : memref<16x128xf32, #tpu.memory_space<vmem>>, vector<16x128xf32>,
    } else {
    }
    %c0 = arith.constant 0 : index
    %c0_1 = arith.constant 0 : index
    %3 = vector.load %arg2[%c0, %c0_1] : memref<16x128xf32, #tpu.memory_space<vmem>>, vector<16x128xf32>
    %4 = arith.truncf %3 : vector<16x128xf32> to vector<16x128xbf16>
    %c0_2 = arith.constant 0 : index
    %c0_3 = arith.constant 0 : index
    %5 = vector.load %arg3[%c0_2, %c0_3] : memref<128x128xbf16, #tpu.memory_space<vmem>>, vector<128x128xbf16>
    %cst = arith.constant dense<0.000000e+00> : vector<16x128xf32>
    %6 = tpu.matmul %4, %5, %cst {dimension_numbers = #tpu.dot_dimension_numbers<[1], [0], [0], [1], [0, 0, 1, 1], [], []>} : vector<16x128xbf16>, vector<128x128xbf16>, vector<16x128xf32> -> vector<16x128xf32>
    %c0_4 = arith.constant 0 : index
    %c0_5 = arith.constant 0 : index
    %7 = vector.load %arg4[%c0_4, %c0_5] : memref<1x128xf32, #tpu.memory_space<vmem>>, vector<1x128xf32>
    %8 = vector.broadcast %7 : vector<1x128xf32> to vector<16x128xf32>
    %9 = arith.addf %6, %8 : vector<16x128xf32>
    %10 = arith.mulf %9, %9 : vector<16x128xf32>
    %11 = arith.mulf %9, %10 : vector<16x128xf32>
    %cst_6 = arith.constant 4.471500e-02 : f32
    %12 = vector.broadcast %cst_6 : f32 to vector<16x128xf32>
    %13 = arith.mulf %12, %11 : vector<16x128xf32>
    %14 = arith.addf %9, %13 : vector<16x128xf32>
    %cst_7 = arith.constant 0.797884583 : f32
    %15 = vector.broadcast %cst_7 : f32 to vector<16x128xf32>
    %16 = arith.mulf %15, %14 : vector<16x128xf32>
    %17 = math.tanh %16 : vector<16x128xf32>
    %cst_8 = arith.constant 1.000000e+00 : f32
    %18 = vector.broadcast %cst_8 : f32 to vector<16x128xf32>
    %19 = arith.addf %18, %17 : vector<16x128xf32>
    %cst_9 = arith.constant 5.000000e-01 : f32
    %20 = vector.broadcast %cst_9 : f32 to vector<16x128xf32>
    %21 = arith.mulf %20, %19 : vector<16x128xf32>
    %22 = arith.mulf %9, %21 : vector<16x128xf32>
    %c0_10 = arith.constant 0 : index
    %c0_11 = arith.constant 0 : index
    %23 = vector.load %arg8[%c0_10, %c0_11] : memref<16x128xf32, #tpu.memory_space<vmem>>, vector<16x128xf32>
    %24 = arith.truncf %22 : vector<16x128xf32> to vector<16x128xbf16>
    %c0_12 = arith.constant 0 : index
    %c0_13 = arith.constant 0 : index
    %25 = vector.load %arg5[%c0_12, %c0_13] : memref<128x128xbf16, #tpu.memory_space<vmem>>, vector<128x128xbf16>
    %cst_14 = arith.constant dense<0.000000e+00> : vector<16x128xf32>
    %26 = tpu.matmul %24, %25, %cst_14 {dimension_numbers = #tpu.dot_dimension_numbers<[1], [0], [0], [1], [0, 0, 1, 1], [], []>} : vector<16x128xbf16>, vector<128x128xbf16>, vector<16x128xf32> -> vector<16x128xf32>
    %27 = arith.addf %23, %26 : vector<16x128xf32>
    %c0_15 = arith.constant 0 : index
    %c0_16 = arith.constant 0 : index
    %28 = vector.load %arg8[%c0_15, %c0_16] : memref<16x128xf32, #tpu.memory_space<vmem>>, vector<16x128xf32>
    tpu.vector_store %arg8[%c0_15, %c0_16], %27 {strides = array<i32>} : memref<16x128xf32, #tpu.memory_space<vmem>>, vector<16x128xf32>,
    %c0_i32_17 = arith.constant 0 : i32
    %29 = arith.cmpi eq, %arg1, %c0_i32_17 : i32
    %30 = arith.extui %29 : i1 to i32
    %c0_i32_18 = arith.constant 0 : i32
    %31 = arith.cmpi ne, %30, %c0_i32_18 : i32
    scf.if %31 {
      %c0_19 = arith.constant 0 : index
      %c0_20 = arith.constant 0 : index
      %32 = vector.load %arg8[%c0_19, %c0_20] : memref<16x128xf32, #tpu.memory_space<vmem>>, vector<16x128xf32>
      %c0_21 = arith.constant 0 : index
      %c0_22 = arith.constant 0 : index
      %33 = vector.load %arg6[%c0_21, %c0_22] : memref<1x128xf32, #tpu.memory_space<vmem>>, vector<1x128xf32>
      %34 = vector.broadcast %33 : vector<1x128xf32> to vector<16x128xf32>
      %35 = arith.addf %32, %34 : vector<16x128xf32>
      %c0_23 = arith.constant 0 : index
      %c0_24 = arith.constant 0 : index
      %36 = vector.load %arg7[%c0_23, %c0_24] : memref<16x128xf32, #tpu.memory_space<vmem>>, vector<16x128xf32>
      tpu.vector_store %arg7[%c0_23, %c0_24], %35 {strides = array<i32>} : memref<16x128xf32, #tpu.memory_space<vmem>>, vector<16x128xf32>,
    } else {
    }
    return
  }
  func.func @transform_0(%arg0: i32, %arg1: i32) -> (i32, i32) {
    %c0_i32 = arith.constant 0 : i32
    %c0_i32_0 = arith.constant 0 : i32
    return %arg0, %c0_i32 : i32, i32
  }
  func.func @transform_1(%arg0: i32, %arg1: i32) -> (i32, i32) {
    %c0_i32 = arith.constant 0 : i32
    %c0_i32_0 = arith.constant 0 : i32
    return %c0_i32, %arg1 : i32, i32
  }
  func.func @transform_2(%arg0: i32, %arg1: i32) -> (i32, i32) {
    %c0_i32 = arith.constant 0 : i32
    %c0_i32_0 = arith.constant 0 : i32
    return %c0_i32, %arg1 : i32, i32
  }
  func.func @transform_3(%arg0: i32, %arg1: i32) -> (i32, i32) {
    %c0_i32 = arith.constant 0 : i32
    %c0_i32_0 = arith.constant 0 : i32
    return %arg1, %c0_i32 : i32, i32
  }
  func.func @transform_4(%arg0: i32, %arg1: i32) -> (i32, i32) {
    %c0_i32 = arith.constant 0 : i32
    %c0_i32_0 = arith.constant 0 : i32
    %c0_i32_1 = arith.constant 0 : i32
    return %c0_i32, %c0_i32_0 : i32, i32
  }
  func.func @transform_5(%arg0: i32, %arg1: i32) -> (i32, i32) {
    %c0_i32 = arith.constant 0 : i32
    %c0_i32_0 = arith.constant 0 : i32
    return %arg0, %c0_i32 : i32, i32
  }
}

module attributes {stable_mosaic.version = 11 : i64} {
  func.func @ffn_kernel(%arg0: i32, %arg1: i32, %arg2: memref<16x128xf32, #tpu.memory_space<vmem>>, %arg3: memref<128x128xbf16, #tpu.memory_space<vmem>>, %arg4: memref<1x128xf32, #tpu.memory_space<vmem>>, %arg5: memref<128x128xbf16, #tpu.memory_space<vmem>>, %arg6: memref<1x128xf32, #tpu.memory_space<vmem>>, %arg7: memref<16x128xf32, #tpu.memory_space<vmem>>, %arg8: memref<16x128xf32, #tpu.memory_space<vmem>>) attributes {dimension_semantics = [#tpu.dimension_semantics<parallel>, #tpu.dimension_semantics<arbitrary>], iteration_bounds = array<i64: 1, 1>, scalar_prefetch = 0 : i64, scratch_operands = 1 : i64, tpu.core_type = #tpu.core_type<tc>, window_params = [{transform_indices = @transform_0, window_bounds = array<i64: 16, 128>}, {transform_indices = @transform_1, window_bounds = array<i64: 128, 128>}, {transform_indices = @transform_2, window_bounds = array<i64: 1, 128>}, {transform_indices = @transform_3, window_bounds = array<i64: 128, 128>}, {pipeline_mode = #tpu.pipeline_mode<synchronous>, transform_indices = @transform_4, window_bounds = array<i64: 1, 128>}, {transform_indices = @transform_5, window_bounds = array<i64: 16, 128>}]} {
    %c0_i32 = arith.constant 0 : i32
    %0 = arith.cmpi eq, %arg1, %c0_i32 : i32
    %1 = arith.extui %0 : i1 to i32
    %c0_i32_0 = arith.constant 0 : i32
    %2 = arith.cmpi ne, %1, %c0_i32_0 : i32
    scf.if %2 {
      %cst_19 = arith.constant 0.000000e+00 : f32
      %32 = vector.broadcast %cst_19 : f32 to vector<16x128xf32>
      %c0_20 = arith.constant 0 : index
      %c0_21 = arith.constant 0 : index
      %33 = vector.load %arg8[%c0_20, %c0_21] : memref<16x128xf32, #tpu.memory_space<vmem>>, vector<16x128xf32>
      tpu.vector_store %arg8[%c0_20, %c0_21], %32 {strides = array<i32>} : memref<16x128xf32, #tpu.memory_space<vmem>>, vector<16x128xf32>,
    } else {
    }
    %c0 = arith.constant 0 : index
    %c0_1 = arith.constant 0 : index
    %3 = vector.load %arg2[%c0, %c0_1] : memref<16x128xf32, #tpu.memory_space<vmem>>, vector<16x128xf32>
    %4 = arith.truncf %3 : vector<16x128xf32> to vector<16x128xbf16>
    %c0_2 = arith.constant 0 : index
    %c0_3 = arith.constant 0 : index
    %5 = vector.load %arg3[%c0_2, %c0_3] : memref<128x128xbf16, #tpu.memory_space<vmem>>, vector<128x128xbf16>
    %cst = arith.constant dense<0.000000e+00> : vector<16x128xf32>
    %6 = tpu.matmul %4, %5, %cst {dimension_numbers = #tpu.dot_dimension_numbers<[1], [0], [0], [1], [0, 0, 1, 1], [], []>} : vector<16x128xbf16>, vector<128x128xbf16>, vector<16x128xf32> -> vector<16x128xf32>
    %c0_4 = arith.constant 0 : index
    %c0_5 = arith.constant 0 : index
    %7 = vector.load %arg4[%c0_4, %c0_5] : memref<1x128xf32, #tpu.memory_space<vmem>>, vector<1x128xf32>
    %8 = vector.broadcast %7 : vector<1x128xf32> to vector<16x128xf32>
    %9 = arith.addf %6, %8 : vector<16x128xf32>
    %10 = arith.mulf %9, %9 : vector<16x128xf32>
    %11 = arith.mulf %9, %10 : vector<16x128xf32>
    %cst_6 = arith.constant 4.471500e-02 : f32
    %12 = vector.broadcast %cst_6 : f32 to vector<16x128xf32>
    %13 = arith.mulf %12, %11 : vector<16x128xf32>
    %14 = arith.addf %9, %13 : vector<16x128xf32>
    %cst_7 = arith.constant 0.797884583 : f32
    %15 = vector.broadcast %cst_7 : f32 to vector<16x128xf32>
    %16 = arith.mulf %15, %14 : vector<16x128xf32>
    %17 = math.tanh %16 : vector<16x128xf32>
    %cst_8 = arith.constant 1.000000e+00 : f32
    %18 = vector.broadcast %cst_8 : f32 to vector<16x128xf32>
    %19 = arith.addf %18, %17 : vector<16x128xf32>
    %cst_9 = arith.constant 5.000000e-01 : f32
    %20 = vector.broadcast %cst_9 : f32 to vector<16x128xf32>
    %21 = arith.mulf %20, %19 : vector<16x128xf32>
    %22 = arith.mulf %9, %21 : vector<16x128xf32>
    %c0_10 = arith.constant 0 : index
    %c0_11 = arith.constant 0 : index
    %23 = vector.load %arg8[%c0_10, %c0_11] : memref<16x128xf32, #tpu.memory_space<vmem>>, vector<16x128xf32>
    %24 = arith.truncf %22 : vector<16x128xf32> to vector<16x128xbf16>
    %c0_12 = arith.constant 0 : index
    %c0_13 = arith.constant 0 : index
    %25 = vector.load %arg5[%c0_12, %c0_13] : memref<128x128xbf16, #tpu.memory_space<vmem>>, vector<128x128xbf16>
    %cst_14 = arith.constant dense<0.000000e+00> : vector<16x128xf32>
    %26 = tpu.matmul %24, %25, %cst_14 {dimension_numbers = #tpu.dot_dimension_numbers<[1], [0], [0], [1], [0, 0, 1, 1], [], []>} : vector<16x128xbf16>, vector<128x128xbf16>, vector<16x128xf32> -> vector<16x128xf32>
    %27 = arith.addf %23, %26 : vector<16x128xf32>
    %c0_15 = arith.constant 0 : index
    %c0_16 = arith.constant 0 : index
    %28 = vector.load %arg8[%c0_15, %c0_16] : memref<16x128xf32, #tpu.memory_space<vmem>>, vector<16x128xf32>
    tpu.vector_store %arg8[%c0_15, %c0_16], %27 {strides = array<i32>} : memref<16x128xf32, #tpu.memory_space<vmem>>, vector<16x128xf32>,
    %c0_i32_17 = arith.constant 0 : i32
    %29 = arith.cmpi eq, %arg1, %c0_i32_17 : i32
    %30 = arith.extui %29 : i1 to i32
    %c0_i32_18 = arith.constant 0 : i32
    %31 = arith.cmpi ne, %30, %c0_i32_18 : i32
    scf.if %31 {
      %c0_19 = arith.constant 0 : index
      %c0_20 = arith.constant 0 : index
      %32 = vector.load %arg8[%c0_19, %c0_20] : memref<16x128xf32, #tpu.memory_space<vmem>>, vector<16x128xf32>
      %c0_21 = arith.constant 0 : index
      %c0_22 = arith.constant 0 : index
      %33 = vector.load %arg6[%c0_21, %c0_22] : memref<1x128xf32, #tpu.memory_space<vmem>>, vector<1x128xf32>
      %34 = vector.broadcast %33 : vector<1x128xf32> to vector<16x128xf32>
      %35 = arith.addf %32, %34 : vector<16x128xf32>
      %c0_23 = arith.constant 0 : index
      %c0_24 = arith.constant 0 : index
      %36 = vector.load %arg7[%c0_23, %c0_24] : memref<16x128xf32, #tpu.memory_space<vmem>>, vector<16x128xf32>
      tpu.vector_store %arg7[%c0_23, %c0_24], %35 {strides = array<i32>} : memref<16x128xf32, #tpu.memory_space<vmem>>, vector<16x128xf32>,
    } else {
    }
    return
  }
  func.func @transform_0(%arg0: i32, %arg1: i32) -> (i32, i32) {
    %c0_i32 = arith.constant 0 : i32
    %c0_i32_0 = arith.constant 0 : i32
    return %arg0, %c0_i32 : i32, i32
  }
  func.func @transform_1(%arg0: i32, %arg1: i32) -> (i32, i32) {
    %c0_i32 = arith.constant 0 : i32
    %c0_i32_0 = arith.constant 0 : i32
    return %c0_i32, %arg1 : i32, i32
  }
  func.func @transform_2(%arg0: i32, %arg1: i32) -> (i32, i32) {
    %c0_i32 = arith.constant 0 : i32
    %c0_i32_0 = arith.constant 0 : i32
    return %c0_i32, %arg1 : i32, i32
  }
  func.func @transform_3(%arg0: i32, %arg1: i32) -> (i32, i32) {
    %c0_i32 = arith.constant 0 : i32
    %c0_i32_0 = arith.constant 0 : i32
    return %arg1, %c0_i32 : i32, i32
  }
  func.func @transform_4(%arg0: i32, %arg1: i32) -> (i32, i32) {
    %c0_i32 = arith.constant 0 : i32
    %c0_i32_0 = arith.constant 0 : i32
    %c0_i32_1 = arith.constant 0 : i32
    return %c0_i32, %c0_i32_0 : i32, i32
  }
  func.func @transform_5(%arg0: i32, %arg1: i32) -> (i32, i32) {
    %c0_i32 = arith.constant 0 : i32
    %c0_i32_0 = arith.constant 0 : i32
    return %arg0, %c0_i32 : i32, i32
  }
}

</mosaic_0001>

<bundles_post_ra>
// kernel: tpu_custom_call.1
= control target key start
LH: loop header
LB: loop body
LE: loop exit
PB: predicated region body
PF: predicated region fallthrough
CT: control target
= control target key end

     0   :  { %10 = vsyncpa [#allocation4], 0  ;;  %s553_s0 = inlined_call_operand.hbm [shape: f32[16,128], index: 0, kind: input, shape index: {}]   ;;  %s554_s1 = inlined_call_operand.hbm [shape: bf16[128,128], index: 1, kind: input, shape index: {}]   ;;  %s555_s2 = inlined_call_operand.vmem [shape: f32[1,128], index: 2, kind: input, shape index: {}]   ;;  %s556_s3 = inlined_call_operand.hbm [shape: bf16[128,128], index: 3, kind: input, shape index: {}]   ;;  %s557_s4 = inlined_call_operand.vmem [shape: f32[1,128], index: 4, kind: input, shape index: {}]   ;;  %s558_s5 = inlined_call_operand.hbm [shape: f32[16,128], index: 5, kind: output, shape index: {}]  }
   0x1   :  { %11 = vsyncpa [#allocation7], 0  ;;  %s30_s20 = sshll.u32 %s554_s1, 4  ;;  %s31_s20 = int_to_ptr.hbm [resolvable:$true] %s30_s20 }
   0x2   :  { %12 = vsyncpa [#allocation5], 0  ;;  %s491_s21 = smov [#allocation6]   ;;  %s17_s25 = sshll.u32 %s553_s0, 4  ;;  %s18_s25 = int_to_ptr.hbm [resolvable:$true] %s17_s25 }
   0x3   :  { %s32_s22 = sshll.u32 %s491_s21, 4  ;;  %s492_s26 = smov 64   ;;  %s33_s22 = int_to_ptr.vmem [resolvable:$true] %s32_s22 }
   0x4   :  { %s493_s27 = smov 4   ;;  %s494_s28 = smov [#allocation3]  }
   0x5   :  { %38 = dma.hbm_to_vmem [thread:$0]  %s31_s20, 1024, %s33_s22, [#allocation7], %s492_s26, %s492_s26, %s493_s27  }
   0x6   :  { %s19_s29 = sshll.u32 %s494_s28, 4  ;;  %s495_s30 = smov 128   ;;  %s20_s29 = int_to_ptr.vmem [resolvable:$true] %s19_s29 }
   0x7   :  { %s496_s6 = smov 8   ;;  %s45_s8 = sshll.u32 %s556_s3, 4  ;;  %s46_s8 = int_to_ptr.hbm [resolvable:$true] %s45_s8 }
   0x8   :  { %25 = dma.hbm_to_vmem [thread:$0]  %s18_s25, 256, %s20_s29, [#allocation4], %s495_s30, %s495_s30, %s496_s6  }
   0x9   :  { %s497_s9 = smov [#allocation8]  }
   0xa   :  { %s47_s0 = sshll.u32 %s497_s9, 4  ;;  %s48_s0 = int_to_ptr.vmem [resolvable:$true] %s47_s0 }
   0xb   :  { %53 = dma.hbm_to_vmem [thread:$0]  %s46_s8, 1024, %s48_s0, [#allocation7], %s492_s26, %s492_s26, %s493_s27  }
   0xc   :  { %485 = dma.done.wait [#allocation4], 256  }
   0xd   :  { %486 = vsyncadd [#allocation4], 4294967040 }
   0xe   :  { %487 = dma.done.wait [#allocation7], 2048  }
   0xf   :  { %488 = vsyncadd [#allocation7], 4294965248  ;;  %v366_v0 = vld [vmem:[#allocation6 + $0x38] sm:$0xff]  ;;  %v365_v1 = vld [vmem:[#allocation6 + $0x30] sm:$0xff]  ;;  %s498_s12 = smov [#allocation9]   ;;  %s281_s16 = sshll.u32 %s558_s5, 4  ;;  %s282_s16 = int_to_ptr.hbm [resolvable:$true] %s281_s16 }
  0x10   :  { %145 = vmatpush.bf16.msra.mxu0 %v366_v0  ;;  %v364_v2 = vld [vmem:[#allocation6 + $0x28] sm:$0xff]  ;;  %v363_v3 = vld [vmem:[#allocation6 + $0x20] sm:$0xff]  ;;  %v362_v4 = vld [vmem:[#allocation6 + $0x18] sm:$0xff]  ;;  %s279_s13 = sshll.u32 %s498_s12, 4  ;;  %s280_s13 = int_to_ptr.vmem [resolvable:$true] %s279_s13 }
  0x11   :  { %v361_v5 = vld [vmem:[#allocation6 + $0x10] sm:$0xff]  ;;  %v360_v6 = vld [vmem:[#allocation6 + $0x8] sm:$0xff]  ;;  %v359_v7 = vld [vmem:[#allocation6] sm:$0xff] }
  0x12   :  { %v74_v8 = vld [vmem:[#allocation3] sm:$0xff]  ;;  %v75_v9 = vld [vmem:[#allocation3 + $0x8] sm:$0xff]  ;;  %v372_v13 = vld [vmem:[#allocation8 + $0x28] sm:$0xff] }
  0x13   :  { %v76_v10 = vpack.c.bf16 %v75_v9, %v74_v8  ;;  %v374_v11 = vld [vmem:[#allocation8 + $0x38] sm:$0xff]  ;;  %v373_v12 = vld [vmem:[#allocation8 + $0x30] sm:$0xff]  ;;  %v371_v14 = vld [vmem:[#allocation8 + $0x20] sm:$0xff] }
  0x14   :  { %146 = vmatpush.bf16.msra.mxu0 %v365_v1  ;;  %244 = vmatpush.bf16.msra.mxu1 %v374_v11  ;;  %v370_v15 = vld [vmem:[#allocation8 + $0x18] sm:$0xff]  ;;  %v369_v16 = vld [vmem:[#allocation8 + $0x10] sm:$0xff]  ;;  %v368_v17 = vld [vmem:[#allocation8 + $0x8] sm:$0xff] }
  0x15   :  { %v383_v18 = vld [vmem:[%s555_s2] ss:$0 sm:$0xff]  ;;  %v367_v19 = vld [vmem:[#allocation8] sm:$0xff] }
  0x16   :  { %v384_v43 = vld [vmem:[%s557_s4] ss:$0 sm:$0xff] }
  0x18   :  { %147 = vmatpush.bf16.msra.mxu0 %v364_v2  ;;  %245 = vmatpush.bf16.msra.mxu1 %v373_v12 }
  0x1c   :  { %148 = vmatpush.bf16.msra.mxu0 %v363_v3  ;;  %246 = vmatpush.bf16.msra.mxu1 %v372_v13 }
  0x20   :  { %149 = vmatpush.bf16.msra.mxu0 %v362_v4  ;;  %247 = vmatpush.bf16.msra.mxu1 %v371_v14 }
  0x24   :  { %150 = vmatpush.bf16.msra.mxu0 %v361_v5  ;;  %248 = vmatpush.bf16.msra.mxu1 %v370_v15 }
  0x28   :  { %151 = vmatpush.bf16.msra.mxu0 %v360_v6  ;;  %249 = vmatpush.bf16.msra.mxu1 %v369_v16 }
  0x2c   :  { %152 = vmatpush.bf16.msra.mxu0 %v359_v7  ;;  %250 = vmatpush.bf16.msra.mxu1 %v368_v17 }
  0x2f   :  { %153 = vmatmul.bf16.vlgmr.msra.gmra.mxu0 %v76_v10 }
  0x30   :  { %251 = vmatpush.bf16.msra.mxu1 %v367_v19 }
  0xac   :  { %v154_v20 = vpop.f32.mrf.mxu0 }
  0xad   :  { %v155_v21 = vadd.f32 %v383_v18, %v154_v20 }
  0xaf   :  { %v159_v22 = vmul.f32 %v155_v21, %v155_v21 }
  0xb1   :  { %v161_v23 = vmul.f32 %v159_v22, %v155_v21 }
  0xb3   :  { %v163_v24 = vmul.f32 0.044715, %v161_v23 }
  0xb4   :  { %v156_v25 = vpop.f32.mrf.mxu0 }
  0xb5   :  { %v165_v26 = vadd.f32 %v163_v24, %v155_v21  ;;  %v157_v27 = vadd.f32 %v383_v18, %v156_v25 }
  0xb7   :  { %v160_v28 = vmul.f32 %v157_v27, %v157_v27  ;;  %v167_v29 = vmul.f32 0.7978846, %v165_v26 }
  0xb9   :  { %v162_v30 = vmul.f32 %v160_v28, %v157_v27  ;;  %385 = vtanh.f32 %v167_v29 }
  0xbb   :  { %v164_v31 = vmul.f32 0.044715, %v162_v30 }
  0xbd   :  { %v166_v32 = vadd.f32 %v164_v31, %v157_v27 }
  0xbf   :  { %v168_v33 = vmul.f32 0.7978846, %v166_v32  ;;  %v386_v34 = vpop.eup %385 }
  0xc0   :  { %v171_v35 = vadd.f32 1.0, %v386_v34 }
  0xc1   :  { %387 = vtanh.f32 %v168_v33 }
  0xc2   :  { %v173_v38 = vmul.f32 0.5, %v171_v35 }
  0xc4   :  { %v175_v40 = vmul.f32 %v173_v38, %v155_v21 }
  0xc7   :  { %v388_v36 = vpop.eup %387 }
  0xc8   :  { %v172_v37 = vadd.f32 1.0, %v388_v36 }
  0xca   :  { %v174_v39 = vmul.f32 0.5, %v172_v37 }
  0xcc   :  { %v176_v41 = vmul.f32 %v174_v39, %v157_v27 }
  0xce   :  { %v179_v42 = vpack.c.bf16 %v176_v41, %v175_v40 }
  0xd0   :  { %252 = vmatmul.bf16.vlgmr.msra.gmra.mxu1 %v179_v42 }
 0x14d   :  { %v253_v44 = vpop.f32.mrf.mxu1 }
 0x14e   :  { %v271_v45 = vadd.f32 %v384_v43, %v253_v44 }
 0x150   :  { %273 = vst [vmem:[#allocation9] sm:$0xff] %v271_v45 }
 0x155   :  { %v255_v46 = vpop.f32.mrf.mxu1 }
 0x156   :  { %v272_v47 = vadd.f32 %v384_v43, %v255_v46 }
 0x158   :  { %274 = vst [vmem:[#allocation9 + $0x8] sm:$0xff] %v272_v47 }
 0x159   :  { %287 = dma.vmem_to_hbm [thread:$0]  %s280_s13, 256, %s282_s16, [#allocation5], %s495_s30, %s495_s30, %s496_s6  }
 0x15a   :  { %489 = dma.done.wait [#allocation5], 256  }
 0x15b   :  { %490 = vsyncadd [#allocation5], 4294967040 }
 0x15c   :  { %292 = vsyncpa [#allocation4], 1 }
 0x15d   :  { %293 = vsyncpa [#allocation7], 1 }
 0x15e   :  { %294 = vsyncpa [#allocation5], 1 }

// kernel: tpu_custom_call.1
= control target key start
LH: loop header
LB: loop body
LE: loop exit
PB: predicated region body
PF: predicated region fallthrough
CT: control target
= control target key end

     0   :  { %10 = vsyncpa [#allocation4], 0  ;;  %s553_s0 = inlined_call_operand.hbm [shape: f32[16,128], index: 0, kind: input, shape index: {}]   ;;  %s554_s1 = inlined_call_operand.hbm [shape: bf16[128,128], index: 1, kind: input, shape index: {}]   ;;  %s555_s2 = inlined_call_operand.vmem [shape: f32[1,128], index: 2, kind: input, shape index: {}]   ;;  %s556_s3 = inlined_call_operand.hbm [shape: bf16[128,128], index: 3, kind: input, shape index: {}]   ;;  %s557_s4 = inlined_call_operand.vmem [shape: f32[1,128], index: 4, kind: input, shape index: {}]   ;;  %s558_s5 = inlined_call_operand.hbm [shape: f32[16,128], index: 5, kind: output, shape index: {}]  }
   0x1   :  { %11 = vsyncpa [#allocation7], 0  ;;  %s30_s20 = sshll.u32 %s554_s1, 4  ;;  %s31_s20 = int_to_ptr.hbm [resolvable:$true] %s30_s20 }
   0x2   :  { %12 = vsyncpa [#allocation5], 0  ;;  %s491_s21 = smov [#allocation6]   ;;  %s17_s25 = sshll.u32 %s553_s0, 4  ;;  %s18_s25 = int_to_ptr.hbm [resolvable:$true] %s17_s25 }
   0x3   :  { %s32_s22 = sshll.u32 %s491_s21, 4  ;;  %s492_s26 = smov 64   ;;  %s33_s22 = int_to_ptr.vmem [resolvable:$true] %s32_s22 }
   0x4   :  { %s493_s27 = smov 4   ;;  %s494_s28 = smov [#allocation3]  }
   0x5   :  { %38 = dma.hbm_to_vmem [thread:$0]  %s31_s20, 1024, %s33_s22, [#allocation7], %s492_s26, %s492_s26, %s493_s27  }
   0x6   :  { %s19_s29 = sshll.u32 %s494_s28, 4  ;;  %s495_s30 = smov 128   ;;  %s20_s29 = int_to_ptr.vmem [resolvable:$true] %s19_s29 }
   0x7   :  { %s496_s6 = smov 8   ;;  %s45_s8 = sshll.u32 %s556_s3, 4  ;;  %s46_s8 = int_to_ptr.hbm [resolvable:$true] %s45_s8 }
   0x8   :  { %25 = dma.hbm_to_vmem [thread:$0]  %s18_s25, 256, %s20_s29, [#allocation4], %s495_s30, %s495_s30, %s496_s6  }
   0x9   :  { %s497_s9 = smov [#allocation8]  }
   0xa   :  { %s47_s0 = sshll.u32 %s497_s9, 4  ;;  %s48_s0 = int_to_ptr.vmem [resolvable:$true] %s47_s0 }
   0xb   :  { %53 = dma.hbm_to_vmem [thread:$0]  %s46_s8, 1024, %s48_s0, [#allocation7], %s492_s26, %s492_s26, %s493_s27  }
   0xc   :  { %485 = dma.done.wait [#allocation4], 256  }
   0xd   :  { %486 = vsyncadd [#allocation4], 4294967040 }
   0xe   :  { %487 = dma.done.wait [#allocation7], 2048  }
   0xf   :  { %488 = vsyncadd [#allocation7], 4294965248  ;;  %v366_v0 = vld [vmem:[#allocation6 + $0x38] sm:$0xff]  ;;  %v365_v1 = vld [vmem:[#allocation6 + $0x30] sm:$0xff]  ;;  %s498_s12 = smov [#allocation9]   ;;  %s281_s16 = sshll.u32 %s558_s5, 4  ;;  %s282_s16 = int_to_ptr.hbm [resolvable:$true] %s281_s16 }
  0x10   :  { %145 = vmatpush.bf16.msra.mxu0 %v366_v0  ;;  %v364_v2 = vld [vmem:[#allocation6 + $0x28] sm:$0xff]  ;;  %v363_v3 = vld [vmem:[#allocation6 + $0x20] sm:$0xff]  ;;  %v362_v4 = vld [vmem:[#allocation6 + $0x18] sm:$0xff]  ;;  %s279_s13 = sshll.u32 %s498_s12, 4  ;;  %s280_s13 = int_to_ptr.vmem [resolvable:$true] %s279_s13 }
  0x11   :  { %v361_v5 = vld [vmem:[#allocation6 + $0x10] sm:$0xff]  ;;  %v360_v6 = vld [vmem:[#allocation6 + $0x8] sm:$0xff]  ;;  %v359_v7 = vld [vmem:[#allocation6] sm:$0xff] }
  0x12   :  { %v74_v8 = vld [vmem:[#allocation3] sm:$0xff]  ;;  %v75_v9 = vld [vmem:[#allocation3 + $0x8] sm:$0xff]  ;;  %v372_v13 = vld [vmem:[#allocation8 + $0x28] sm:$0xff] }
  0x13   :  { %v76_v10 = vpack.c.bf16 %v75_v9, %v74_v8  ;;  %v374_v11 = vld [vmem:[#allocation8 + $0x38] sm:$0xff]  ;;  %v373_v12 = vld [vmem:[#allocation8 + $0x30] sm:$0xff]  ;;  %v371_v14 = vld [vmem:[#allocation8 + $0x20] sm:$0xff] }
  0x14   :  { %146 = vmatpush.bf16.msra.mxu0 %v365_v1  ;;  %244 = vmatpush.bf16.msra.mxu1 %v374_v11  ;;  %v370_v15 = vld [vmem:[#allocation8 + $0x18] sm:$0xff]  ;;  %v369_v16 = vld [vmem:[#allocation8 + $0x10] sm:$0xff]  ;;  %v368_v17 = vld [vmem:[#allocation8 + $0x8] sm:$0xff] }
  0x15   :  { %v383_v18 = vld [vmem:[%s555_s2] ss:$0 sm:$0xff]  ;;  %v367_v19 = vld [vmem:[#allocation8] sm:$0xff] }
  0x16   :  { %v384_v43 = vld [vmem:[%s557_s4] ss:$0 sm:$0xff] }
  0x18   :  { %147 = vmatpush.bf16.msra.mxu0 %v364_v2  ;;  %245 = vmatpush.bf16.msra.mxu1 %v373_v12 }
  0x1c   :  { %148 = vmatpush.bf16.msra.mxu0 %v363_v3  ;;  %246 = vmatpush.bf16.msra.mxu1 %v372_v13 }
  0x20   :  { %149 = vmatpush.bf16.msra.mxu0 %v362_v4  ;;  %247 = vmatpush.bf16.msra.mxu1 %v371_v14 }
  0x24   :  { %150 = vmatpush.bf16.msra.mxu0 %v361_v5  ;;  %248 = vmatpush.bf16.msra.mxu1 %v370_v15 }
  0x28   :  { %151 = vmatpush.bf16.msra.mxu0 %v360_v6  ;;  %249 = vmatpush.bf16.msra.mxu1 %v369_v16 }
  0x2c   :  { %152 = vmatpush.bf16.msra.mxu0 %v359_v7  ;;  %250 = vmatpush.bf16.msra.mxu1 %v368_v17 }
  0x2f   :  { %153 = vmatmul.bf16.vlgmr.msra.gmra.mxu0 %v76_v10 }
  0x30   :  { %251 = vmatpush.bf16.msra.mxu1 %v367_v19 }
  0xac   :  { %v154_v20 = vpop.f32.mrf.mxu0 }
  0xad   :  { %v155_v21 = vadd.f32 %v383_v18, %v154_v20 }
  0xaf   :  { %v159_v22 = vmul.f32 %v155_v21, %v155_v21 }
  0xb1   :  { %v161_v23 = vmul.f32 %v159_v22, %v155_v21 }
  0xb3   :  { %v163_v24 = vmul.f32 0.044715, %v161_v23 }
  0xb4   :  { %v156_v25 = vpop.f32.mrf.mxu0 }
  0xb5   :  { %v165_v26 = vadd.f32 %v163_v24, %v155_v21  ;;  %v157_v27 = vadd.f32 %v383_v18, %v156_v25 }
  0xb7   :  { %v160_v28 = vmul.f32 %v157_v27, %v157_v27  ;;  %v167_v29 = vmul.f32 0.7978846, %v165_v26 }
  0xb9   :  { %v162_v30 = vmul.f32 %v160_v28, %v157_v27  ;;  %385 = vtanh.f32 %v167_v29 }
  0xbb   :  { %v164_v31 = vmul.f32 0.044715, %v162_v30 }
  0xbd   :  { %v166_v32 = vadd.f32 %v164_v31, %v157_v27 }
  0xbf   :  { %v168_v33 = vmul.f32 0.7978846, %v166_v32  ;;  %v386_v34 = vpop.eup %385 }
  0xc0   :  { %v171_v35 = vadd.f32 1.0, %v386_v34 }
  0xc1   :  { %387 = vtanh.f32 %v168_v33 }
  0xc2   :  { %v173_v38 = vmul.f32 0.5, %v171_v35 }
  0xc4   :  { %v175_v40 = vmul.f32 %v173_v38, %v155_v21 }
  0xc7   :  { %v388_v36 = vpop.eup %387 }
  0xc8   :  { %v172_v37 = vadd.f32 1.0, %v388_v36 }
  0xca   :  { %v174_v39 = vmul.f32 0.5, %v172_v37 }
  0xcc   :  { %v176_v41 = vmul.f32 %v174_v39, %v157_v27 }
  0xce   :  { %v179_v42 = vpack.c.bf16 %v176_v41, %v175_v40 }
  0xd0   :  { %252 = vmatmul.bf16.vlgmr.msra.gmra.mxu1 %v179_v42 }
 0x14d   :  { %v253_v44 = vpop.f32.mrf.mxu1 }
 0x14e   :  { %v271_v45 = vadd.f32 %v384_v43, %v253_v44 }
 0x150   :  { %273 = vst [vmem:[#allocation9] sm:$0xff] %v271_v45 }
 0x155   :  { %v255_v46 = vpop.f32.mrf.mxu1 }
 0x156   :  { %v272_v47 = vadd.f32 %v384_v43, %v255_v46 }
 0x158   :  { %274 = vst [vmem:[#allocation9 + $0x8] sm:$0xff] %v272_v47 }
 0x159   :  { %287 = dma.vmem_to_hbm [thread:$0]  %s280_s13, 256, %s282_s16, [#allocation5], %s495_s30, %s495_s30, %s496_s6  }
 0x15a   :  { %489 = dma.done.wait [#allocation5], 256  }
 0x15b   :  { %490 = vsyncadd [#allocation5], 4294967040 }
 0x15c   :  { %292 = vsyncpa [#allocation4], 1 }
 0x15d   :  { %293 = vsyncpa [#allocation7], 1 }
 0x15e   :  { %294 = vsyncpa [#allocation5], 1 }

</bundles_post_ra>
